<compile_context>
chip_gen: v7x
topology: tpu7x:2x2x1
jax: 0.10.0
libtpu: 0.0.40
codegen_flags: <defaults>
</compile_context>

<pallas_src>
import jax
import jax.numpy as jnp
from jax import lax
from jax.experimental import pallas as pl
from jax.experimental.pallas import tpu as pltpu


RATIO = 0.8  # TopKPooling ratio


# ----------------------------------------------------------------------------- fused kernel


def fused_gnn_kernel(
    a_ref,        # [Np, Np] bf16 adjacency A[i,j] = w(edge j->i)  (no self-loop fill)
    x_ref,        # [Np, Fin_pad] f32 node features (zero padded rows / cols)
    seg_ref,      # [Gp, Np] f32 one-hot graph membership
    dis_ref,      # [Np, 1]  f32 D^-1/2 (degree includes self-loop fill)
    selfw_ref,    # [Np, 1]  f32 fill * dis^2  (self-loop-fill contribution)
    bidc_ref,     # [Np, 1]  f32 per-node graph id (padded nodes = -1)
    bidr_ref,     # [1, Np]  f32 same ids, row oriented
    w1_ref, b1_ref,    # GCNConv1 weight [Fin_pad,64], bias [1,64]
    w2_ref, b2_ref,    # GCNConv2 weight [64,64],      bias [1,64]
    p_ref,             # TopKPooling score vector as a ROW [1,64]
    lw1_ref, lb1_ref,  # lin1 [64,64],[1,64]
    lw2_ref, lb2_ref,  # lin2 [64,32],[1,32]
    lw3_ref, lb3_ref,  # lin3 as a ROW [1,32], bias [1,1]
    o_ref,             # output [Gp, 1]
):
    f32 = jnp.float32
    bf16 = jnp.bfloat16
    npd = a_ref.shape[0]

    a = a_ref[...]            # bf16 [Np,Np]
    dis = dis_ref[...]        # f32  [Np,1]
    selfw = selfw_ref[...]    # f32  [Np,1]

    def gcn_agg(y):
        # A_hat @ y = dis * (A @ (dis*y)) + fill*dis^2 * y   -- (A+I) never materialized.
        # Only the MXU operands go to bf16; the self term stays full precision.
        z = (dis * y).astype(bf16)
        return dis * jnp.dot(a, z, preferred_element_type=f32) + selfw * y

    # ---- conv1 + relu    (GCNConv: A_hat @ (X @ W) + b) ------------------------
    h1 = jnp.maximum(
        gcn_agg(jnp.dot(x_ref[...], w1_ref[...], preferred_element_type=f32))
        + b1_ref[...], 0.0)                                          # [Np,64]

    # ---- conv2 + relu (full, un-pooled graph) ----------------------------------
    h2 = jnp.maximum(
        gcn_agg(jnp.dot(h1, w2_ref[...], preferred_element_type=f32))
        + b2_ref[...], 0.0)                                          # [Np,64]

    # ---- TopKPooling(64, ratio=0.8): score = tanh(h2 @ p / ||p||) --------------
    p = p_ref[...]                                                   # [1,64]
    p_unit = p * lax.rsqrt(jnp.sum(p * p, axis=1, keepdims=True))    # p / ||p||
    s_col = lax.dot_general(h2, p_unit, (((1,), (1,)), ((), ())),
                            preferred_element_type=f32)              # [Np,1]
    s_row = lax.dot_general(p_unit, h2, (((1,), (1,)), ((), ())),
                            preferred_element_type=f32)              # [1,Np]
    t_col = jnp.tanh(s_col)
    t_row = jnp.tanh(s_row)

    # Per-graph descending rank (ties broken by lower node index; approximates
    # torch.topk tie ordering).  The i==j diagonal is excluded explicitly so ulp
    # differences between the two score orientations can never make a node count
    # itself as "better".
    idx_col = lax.broadcasted_iota(jnp.int32, (npd, 1), 0)           # [Np,1]
    idx_row = lax.broadcasted_iota(jnp.int32, (1, npd), 1)           # [1,Np]
    same = bidr_ref[...] == bidc_ref[...]                            # [Np,Np] bool
    better = same & (idx_row != idx_col) & (
        (t_row > t_col) | ((t_row == t_col) & (idx_row < idx_col)))
    rank = jnp.sum(jnp.where(better, f32(1.0), f32(0.0)),
                   axis=1, keepdims=True)                            # [Np,1]
    cnt = jnp.sum(jnp.where(same, f32(1.0), f32(0.0)),
                  axis=1, keepdims=True)                             # nodes in this node's graph
    k = jnp.ceil(RATIO * cnt)                                        # kept nodes per graph
    keep = jnp.where(rank < k, f32(1.0), f32(0.0))                   # selected nodes
    node_w = keep * t_col                                            # tanh(score) multiplier

    # ---- x1 + x2 in ONE pooling dot: fold per-graph 1/N and 1/k onto the nodes --
    inv_n = 1.0 / jnp.maximum(cnt, 1.0)
    inv_k = 1.0 / jnp.maximum(k, 1.0)
    x12 = jnp.dot(seg_ref[...], h1 * inv_n + (h2 * node_w) * inv_k,
                  preferred_element_type=f32)                        # [Gp,64] == x1 + x2

    # ---- MLP head (dropout = identity in eval mode) -----------------------------
    h = jnp.maximum(jnp.dot(x12, lw1_ref[...], preferred_element_type=f32)
                    + lb1_ref[...], 0.0)
    h = jnp.maximum(jnp.dot(h, lw2_ref[...], preferred_element_type=f32)
                    + lb2_ref[...], 0.0)
    # lin3 output width is 1 -> VPU lane reduction instead of an MXU dot
    logits = jnp.sum(h * lw3_ref[...], axis=1, keepdims=True) + lb3_ref[...]
    # TODO(synk): for large Gp emit the output lane-dense as [1,Gp] to avoid masked stores.
    o_ref[...] = jax.nn.sigmoid(logits)


# ----------------------------------------------------------------------------- wrapper


def _round_up(v, m):
    return ((v + m - 1) // m) * m


def net_forward(x, edge_index, edge_attr, batch, num_graphs, params):
    n = x.shape[0]
    n_pad = _round_up(max(n, 8), 8)            # sublane multiple
    g_pad = _round_up(max(num_graphs, 8), 8)
    fin_pad = params["w1"].shape[0]

    src = edge_index[0]
    dst = edge_index[1]

    # Dense weighted adjacency (XLA scatter); the kernel reads it as bf16.
    # TODO(synk): for large graphs build A_hat stripes in-kernel from CSR offsets via
    #             scalar prefetch + manual DMA instead of a dense [N,N] scatter.
    a = jnp.zeros((n_pad, n_pad), jnp.float32).at[dst, src].add(edge_attr)
    a_bf16 = a.astype(jnp.bfloat16)

    # GCN normalization vectors (O(E)+O(N), wrapper side).  add_remaining_self_loops:
    # existing self loops keep their weight; only missing ones get fill 1.0.
    deg = jnp.zeros((n_pad,), jnp.float32).at[dst].add(edge_attr)
    has_self = jnp.zeros((n_pad,), jnp.float32).at[dst].max(
        (src == dst).astype(jnp.float32))
    fill = 1.0 - has_self
    deg_hat = deg + fill
    dis = jnp.where(deg_hat > 0.0, lax.rsqrt(jnp.maximum(deg_hat, 1e-30)), 0.0)
    dis_col = dis.reshape(n_pad, 1)
    selfw = (fill * dis * dis).reshape(n_pad, 1)

    x_pad = jnp.zeros((n_pad, fin_pad), jnp.float32).at[:n, : x.shape[1]].set(x)

    batch_i = batch.astype(jnp.int32)
    batch_pad = jnp.full((n_pad,), -1, jnp.int32).at[:n].set(batch_i)
    seg = (jnp.arange(g_pad, dtype=jnp.int32)[:, None] == batch_pad[None, :]
           ).astype(jnp.float32)                                   # [Gp, Np]
    bid = batch_pad.astype(jnp.float32)
    bid_col = bid.reshape(n_pad, 1)
    bid_row = bid.reshape(1, n_pad)

    # VMEM budget: bf16 A + a few live [Np,Np] temporaries in the ranking block.
    vmem_needed = (2 * n_pad * n_pad            # A (bf16)
                   + 3 * 4 * n_pad * n_pad      # ~3 live [Np,Np] f32/bool rank temporaries
                   + 16 * 4 * n_pad * 64        # h1/h2/aggregation temporaries
                   + 4 * g_pad * 64
                   + (2 << 20))
    vmem_limit = int(min(48 << 20, max(16 << 20, vmem_needed)))

    vmem_spec = pl.BlockSpec(memory_space=pltpu.MemorySpace.VMEM)
    out = pl.pallas_call(
        fused_gnn_kernel,
        out_shape=jax.ShapeDtypeStruct((g_pad, 1), jnp.float32),
        in_specs=[vmem_spec] * 18,
        out_specs=vmem_spec,
        compiler_params=pltpu.CompilerParams(vmem_limit_bytes=vmem_limit),
    )(a_bf16, x_pad, seg, dis_col, selfw, bid_col, bid_row,
      params["w1"], params["b1"], params["w2"], params["b2"], params["p_topk"],
      params["lw1"], params["lb1"], params["lw2"], params["lb2"],
      params["lw3"], params["lb3"])

    return out[:num_graphs, 0]                                     # squeeze(1)


# ----------------------------------------------------------------------------- params & main


def make_params(key):
    ks = jax.random.split(key, 10)
    s = 0.1
    fin_pad = 8  # input features padded 3 -> 8 (extra w1 rows only ever see zero inputs)
    return {
        "w1": s * jax.random.normal(ks[0], (fin_pad, 64), jnp.float32),
        "b1": s * jax.random.normal(ks[1], (1, 64), jnp.float32),
        "w2": s * jax.random.normal(ks[2], (64, 64), jnp.float32),
        "b2": s * jax.random.normal(ks[3], (1, 64), jnp.float32),
        "p_topk": jax.random.normal(ks[4], (1, 64), jnp.float32),   # TopK score vector (row)
        "lw1": s * jax.random.normal(ks[5], (64, 64), jnp.float32),
        "lb1": s * jax.random.normal(ks[6], (1, 64), jnp.float32),
        "lw2": s * jax.random.normal(ks[7], (64, 32), jnp.float32),
        "lb2": s * jax.random.normal(ks[8], (1, 32), jnp.float32),
        "lw3": s * jax.random.normal(ks[9], (1, 32), jnp.float32),  # lin3 weight (row)
        "lb3": jnp.zeros((1, 1), jnp.float32),
    }


if __name__ == "__main__":
    key = jax.random.PRNGKey(0)
    k_x, k_w, k_p = jax.random.split(key, 3)

    # Small synthetic batch of 2 graphs, 12 nodes each (bidirectional ring).
    num_graphs = 2
    nodes_per_graph = 12
    n = num_graphs * nodes_per_graph

    x = jax.random.normal(k_x, (n, 3), jnp.float32)                 # node features [N, 3]
    batch = jnp.repeat(jnp.arange(num_graphs), nodes_per_graph)     # [N]

    src_list, dst_list = [], []
    for g in range(num_graphs):
        off = g * nodes_per_graph
        for i in range(nodes_per_graph):
            j = (i + 1) % nodes_per_graph
            src_list += [off + i, off + j]
            dst_list += [off + j, off + i]
    edge_index = jnp.array([src_list, dst_list], dtype=jnp.int32)   # [2, E]
    edge_attr = jax.random.uniform(k_w, (edge_index.shape[1],),
                                   minval=0.5, maxval=1.5, dtype=jnp.float32)  # [E]

    params = make_params(k_p)

    fwd = jax.jit(net_forward, static_argnums=(4,))
    out = fwd(x, edge_index, edge_attr, batch, num_graphs, params)
    out = jax.block_until_ready(out)

    assert out.shape == (num_graphs,)
    assert bool(jnp.all(jnp.isfinite(out)))
    assert bool(jnp.all((out >= 0.0) & (out <= 1.0)))
    print("KERNEL_OK")
</pallas_src>

<mosaic_0001>
module attributes {stable_mosaic.version = 11 : i64} {
  func.func private @main(%arg0: i32) attributes {dimension_semantics = [#tpu.dimension_semantics<core_parallel>], iteration_bounds = array<i64: 2>, tpu.core_type = #tpu.core_type<sc_scalar_subcore>, window_params = []} {
    return
  }
}

module attributes {stable_mosaic.version = 11 : i64} {
  func.func private @main(%arg0: i32) attributes {dimension_semantics = [#tpu.dimension_semantics<core_parallel>], iteration_bounds = array<i64: 2>, tpu.core_type = #tpu.core_type<sc_scalar_subcore>, window_params = []} {
    return
  }
}

module attributes {stable_mosaic.version = 11 : i64} {
  func.func @fused_gnn_kernel(%arg0: memref<24x24xbf16, #tpu.memory_space<vmem>>, %arg1: memref<24x8xf32, #tpu.memory_space<vmem>>, %arg2: memref<8x24xf32, #tpu.memory_space<vmem>>, %arg3: memref<24x1xf32, #tpu.memory_space<vmem>>, %arg4: memref<24x1xf32, #tpu.memory_space<vmem>>, %arg5: memref<24x1xf32, #tpu.memory_space<vmem>>, %arg6: memref<1x24xf32, #tpu.memory_space<vmem>>, %arg7: memref<8x64xf32, #tpu.memory_space<vmem>>, %arg8: memref<1x64xf32, #tpu.memory_space<vmem>>, %arg9: memref<64x64xf32, #tpu.memory_space<vmem>>, %arg10: memref<1x64xf32, #tpu.memory_space<vmem>>, %arg11: memref<1x64xf32, #tpu.memory_space<vmem>>, %arg12: memref<64x64xf32, #tpu.memory_space<vmem>>, %arg13: memref<1x64xf32, #tpu.memory_space<vmem>>, %arg14: memref<64x32xf32, #tpu.memory_space<vmem>>, %arg15: memref<1x32xf32, #tpu.memory_space<vmem>>, %arg16: memref<1x32xf32, #tpu.memory_space<vmem>>, %arg17: memref<1x1xf32, #tpu.memory_space<vmem>>, %arg18: memref<8x1xf32, #tpu.memory_space<vmem>>) attributes {dimension_semantics = [], scalar_prefetch = 0 : i64, scratch_operands = 0 : i64, tpu.core_type = #tpu.core_type<tc>} {
    %c0 = arith.constant 0 : index
    %c0_0 = arith.constant 0 : index
    %0 = vector.load %arg0[%c0, %c0_0] : memref<24x24xbf16, #tpu.memory_space<vmem>>, vector<24x24xbf16>
    %c0_1 = arith.constant 0 : index
    %c0_2 = arith.constant 0 : index
    %1 = vector.load %arg3[%c0_1, %c0_2] : memref<24x1xf32, #tpu.memory_space<vmem>>, vector<24x1xf32>
    %c0_3 = arith.constant 0 : index
    %c0_4 = arith.constant 0 : index
    %2 = vector.load %arg4[%c0_3, %c0_4] : memref<24x1xf32, #tpu.memory_space<vmem>>, vector<24x1xf32>
    %c0_5 = arith.constant 0 : index
    %c0_6 = arith.constant 0 : index
    %3 = vector.load %arg1[%c0_5, %c0_6] : memref<24x8xf32, #tpu.memory_space<vmem>>, vector<24x8xf32>
    %c0_7 = arith.constant 0 : index
    %c0_8 = arith.constant 0 : index
    %4 = vector.load %arg7[%c0_7, %c0_8] : memref<8x64xf32, #tpu.memory_space<vmem>>, vector<8x64xf32>
    %cst = arith.constant dense<0.000000e+00> : vector<24x64xf32>
    %5 = tpu.matmul %3, %4, %cst {dimension_numbers = #tpu.dot_dimension_numbers<[1], [0], [0], [1], [0, 0, 1, 1], [], []>} : vector<24x8xf32>, vector<8x64xf32>, vector<24x64xf32> -> vector<24x64xf32>
    %6 = vector.broadcast %1 : vector<24x1xf32> to vector<24x64xf32>
    %7 = arith.mulf %6, %5 : vector<24x64xf32>
    %8 = arith.truncf %7 : vector<24x64xf32> to vector<24x64xbf16>
    %cst_9 = arith.constant dense<0.000000e+00> : vector<24x64xf32>
    %9 = tpu.matmul %0, %8, %cst_9 {dimension_numbers = #tpu.dot_dimension_numbers<[1], [0], [0], [1], [0, 0, 1, 1], [], []>} : vector<24x24xbf16>, vector<24x64xbf16>, vector<24x64xf32> -> vector<24x64xf32>
    %10 = vector.broadcast %1 : vector<24x1xf32> to vector<24x64xf32>
    %11 = arith.mulf %10, %9 : vector<24x64xf32>
    %12 = vector.broadcast %2 : vector<24x1xf32> to vector<24x64xf32>
    %13 = arith.mulf %12, %5 : vector<24x64xf32>
    %14 = arith.addf %11, %13 : vector<24x64xf32>
    %c0_10 = arith.constant 0 : index
    %c0_11 = arith.constant 0 : index
    %15 = vector.load %arg8[%c0_10, %c0_11] : memref<1x64xf32, #tpu.memory_space<vmem>>, vector<1x64xf32>
    %16 = vector.broadcast %15 : vector<1x64xf32> to vector<24x64xf32>
    %17 = arith.addf %14, %16 : vector<24x64xf32>
    %cst_12 = arith.constant 0.000000e+00 : f32
    %18 = vector.broadcast %cst_12 : f32 to vector<24x64xf32>
    %19 = arith.maximumf %17, %18 : vector<24x64xf32>
    %c0_13 = arith.constant 0 : index
    %c0_14 = arith.constant 0 : index
    %20 = vector.load %arg9[%c0_13, %c0_14] : memref<64x64xf32, #tpu.memory_space<vmem>>, vector<64x64xf32>
    %cst_15 = arith.constant dense<0.000000e+00> : vector<24x64xf32>
    %21 = tpu.matmul %19, %20, %cst_15 {dimension_numbers = #tpu.dot_dimension_numbers<[1], [0], [0], [1], [0, 0, 1, 1], [], []>} : vector<24x64xf32>, vector<64x64xf32>, vector<24x64xf32> -> vector<24x64xf32>
    %22 = vector.broadcast %1 : vector<24x1xf32> to vector<24x64xf32>
    %23 = arith.mulf %22, %21 : vector<24x64xf32>
    %24 = arith.truncf %23 : vector<24x64xf32> to vector<24x64xbf16>
    %cst_16 = arith.constant dense<0.000000e+00> : vector<24x64xf32>
    %25 = tpu.matmul %0, %24, %cst_16 {dimension_numbers = #tpu.dot_dimension_numbers<[1], [0], [0], [1], [0, 0, 1, 1], [], []>} : vector<24x24xbf16>, vector<24x64xbf16>, vector<24x64xf32> -> vector<24x64xf32>
    %26 = vector.broadcast %1 : vector<24x1xf32> to vector<24x64xf32>
    %27 = arith.mulf %26, %25 : vector<24x64xf32>
    %28 = vector.broadcast %2 : vector<24x1xf32> to vector<24x64xf32>
    %29 = arith.mulf %28, %21 : vector<24x64xf32>
    %30 = arith.addf %27, %29 : vector<24x64xf32>
    %c0_17 = arith.constant 0 : index
    %c0_18 = arith.constant 0 : index
    %31 = vector.load %arg10[%c0_17, %c0_18] : memref<1x64xf32, #tpu.memory_space<vmem>>, vector<1x64xf32>
    %32 = vector.broadcast %31 : vector<1x64xf32> to vector<24x64xf32>
    %33 = arith.addf %30, %32 : vector<24x64xf32>
    %cst_19 = arith.constant 0.000000e+00 : f32
    %34 = vector.broadcast %cst_19 : f32 to vector<24x64xf32>
    %35 = arith.maximumf %33, %34 : vector<24x64xf32>
    %c0_20 = arith.constant 0 : index
    %c0_21 = arith.constant 0 : index
    %36 = vector.load %arg11[%c0_20, %c0_21] : memref<1x64xf32, #tpu.memory_space<vmem>>, vector<1x64xf32>
    %37 = arith.mulf %36, %36 : vector<1x64xf32>
    %cst_22 = arith.constant dense<0.000000e+00> : vector<1xf32>
    %38 = vector.multi_reduction <add>, %37, %cst_22 [1] : vector<1x64xf32> to vector<1xf32>
    %39 = vector.shape_cast %38 : vector<1xf32> to vector<1x1xf32>
    %40 = math.rsqrt %39 : vector<1x1xf32>
    %41 = vector.broadcast %40 : vector<1x1xf32> to vector<1x64xf32>
    %42 = arith.mulf %36, %41 : vector<1x64xf32>
    %cst_23 = arith.constant dense<0.000000e+00> : vector<24x1xf32>
    %43 = tpu.matmul %35, %42, %cst_23 {dimension_numbers = #tpu.dot_dimension_numbers<[1], [1], [0], [0], [0, 0, 1, 0], [], []>} : vector<24x64xf32>, vector<1x64xf32>, vector<24x1xf32> -> vector<24x1xf32>
    %cst_24 = arith.constant dense<0.000000e+00> : vector<1x24xf32>
    %44 = tpu.matmul %42, %35, %cst_24 {dimension_numbers = #tpu.dot_dimension_numbers<[1], [1], [0], [0], [0, 0, 1, 0], [], []>} : vector<1x64xf32>, vector<24x64xf32>, vector<1x24xf32> -> vector<1x24xf32>
    %45 = math.tanh %43 : vector<24x1xf32>
    %46 = math.tanh %44 : vector<1x24xf32>
    %47 = tpu.iota {dimensions = array<i32: 0>} : vector<24x1xi32>
    %48 = tpu.iota {dimensions = array<i32: 1>} : vector<1x24xi32>
    %c0_25 = arith.constant 0 : index
    %c0_26 = arith.constant 0 : index
    %49 = vector.load %arg6[%c0_25, %c0_26] : memref<1x24xf32, #tpu.memory_space<vmem>>, vector<1x24xf32>
    %c0_27 = arith.constant 0 : index
    %c0_28 = arith.constant 0 : index
    %50 = vector.load %arg5[%c0_27, %c0_28] : memref<24x1xf32, #tpu.memory_space<vmem>>, vector<24x1xf32>
    %51 = vector.broadcast %49 : vector<1x24xf32> to vector<24x24xf32>
    %52 = vector.broadcast %50 : vector<24x1xf32> to vector<24x24xf32>
    %53 = arith.cmpf oeq, %51, %52 : vector<24x24xf32>
    %54 = vector.broadcast %48 : vector<1x24xi32> to vector<24x24xi32>
    %55 = vector.broadcast %47 : vector<24x1xi32> to vector<24x24xi32>
    %56 = arith.cmpi ne, %54, %55 : vector<24x24xi32>
    %57 = arith.andi %53, %56 : vector<24x24xi1>
    %58 = vector.broadcast %46 : vector<1x24xf32> to vector<24x24xf32>
    %59 = vector.broadcast %45 : vector<24x1xf32> to vector<24x24xf32>
    %60 = arith.cmpf ogt, %58, %59 : vector<24x24xf32>
    %61 = vector.broadcast %46 : vector<1x24xf32> to vector<24x24xf32>
    %62 = vector.broadcast %45 : vector<24x1xf32> to vector<24x24xf32>
    %63 = arith.cmpf oeq, %61, %62 : vector<24x24xf32>
    %64 = vector.broadcast %48 : vector<1x24xi32> to vector<24x24xi32>
    %65 = vector.broadcast %47 : vector<24x1xi32> to vector<24x24xi32>
    %66 = arith.cmpi slt, %64, %65 : vector<24x24xi32>
    %67 = arith.andi %63, %66 : vector<24x24xi1>
    %68 = arith.ori %60, %67 : vector<24x24xi1>
    %69 = arith.andi %57, %68 : vector<24x24xi1>
    %cst_29 = arith.constant 1.000000e+00 : f32
    %cst_30 = arith.constant 0.000000e+00 : f32
    %70 = vector.broadcast %cst_29 : f32 to vector<24x24xf32>
    %71 = vector.broadcast %cst_30 : f32 to vector<24x24xf32>
    %72 = arith.select %69, %70, %71 : vector<24x24xi1>, vector<24x24xf32>
    %cst_31 = arith.constant dense<0.000000e+00> : vector<24xf32>
    %73 = vector.multi_reduction <add>, %72, %cst_31 [1] : vector<24x24xf32> to vector<24xf32>
    %74 = vector.shape_cast %73 : vector<24xf32> to vector<24x1xf32>
    %cst_32 = arith.constant 1.000000e+00 : f32
    %cst_33 = arith.constant 0.000000e+00 : f32
    %75 = vector.broadcast %cst_32 : f32 to vector<24x24xf32>
    %76 = vector.broadcast %cst_33 : f32 to vector<24x24xf32>
    %77 = arith.select %53, %75, %76 : vector<24x24xi1>, vector<24x24xf32>
    %cst_34 = arith.constant dense<0.000000e+00> : vector<24xf32>
    %78 = vector.multi_reduction <add>, %77, %cst_34 [1] : vector<24x24xf32> to vector<24xf32>
    %79 = vector.shape_cast %78 : vector<24xf32> to vector<24x1xf32>
    %cst_35 = arith.constant 8.000000e-01 : f32
    %80 = vector.broadcast %cst_35 : f32 to vector<24x1xf32>
    %81 = arith.mulf %80, %79 : vector<24x1xf32>
    %82 = math.ceil %81 : vector<24x1xf32>
    %83 = arith.cmpf olt, %74, %82 : vector<24x1xf32>
    %cst_36 = arith.constant 1.000000e+00 : f32
    %cst_37 = arith.constant 0.000000e+00 : f32
    %84 = vector.broadcast %cst_36 : f32 to vector<24x1xf32>
    %85 = vector.broadcast %cst_37 : f32 to vector<24x1xf32>
    %86 = arith.select %83, %84, %85 : vector<24x1xi1>, vector<24x1xf32>
    %87 = arith.mulf %86, %45 : vector<24x1xf32>
    %cst_38 = arith.constant 1.000000e+00 : f32
    %88 = vector.broadcast %cst_38 : f32 to vector<24x1xf32>
    %89 = arith.maximumf %79, %88 : vector<24x1xf32>
    %cst_39 = arith.constant 1.000000e+00 : f32
    %90 = vector.broadcast %cst_39 : f32 to vector<24x1xf32>
    %91 = arith.divf %90, %89 : vector<24x1xf32>
    %cst_40 = arith.constant 1.000000e+00 : f32
    %92 = vector.broadcast %cst_40 : f32 to vector<24x1xf32>
    %93 = arith.maximumf %82, %92 : vector<24x1xf32>
    %cst_41 = arith.constant 1.000000e+00 : f32
    %94 = vector.broadcast %cst_41 : f32 to vector<24x1xf32>
    %95 = arith.divf %94, %93 : vector<24x1xf32>
    %c0_42 = arith.constant 0 : index
    %c0_43 = arith.constant 0 : index
    %96 = vector.load %arg2[%c0_42, %c0_43] : memref<8x24xf32, #tpu.memory_space<vmem>>, vector<8x24xf32>
    %97 = vector.broadcast %91 : vector<24x1xf32> to vector<24x64xf32>
    %98 = arith.mulf %19, %97 : vector<24x64xf32>
    %99 = vector.broadcast %87 : vector<24x1xf32> to vector<24x64xf32>
    %100 = arith.mulf %35, %99 : vector<24x64xf32>
    %101 = vector.broadcast %95 : vector<24x1xf32> to vector<24x64xf32>
    %102 = arith.mulf %100, %101 : vector<24x64xf32>
    %103 = arith.addf %98, %102 : vector<24x64xf32>
    %cst_44 = arith.constant dense<0.000000e+00> : vector<8x64xf32>
    %104 = tpu.matmul %96, %103, %cst_44 {dimension_numbers = #tpu.dot_dimension_numbers<[1], [0], [0], [1], [0, 0, 1, 1], [], []>} : vector<8x24xf32>, vector<24x64xf32>, vector<8x64xf32> -> vector<8x64xf32>
    %c0_45 = arith.constant 0 : index
    %c0_46 = arith.constant 0 : index
    %105 = vector.load %arg12[%c0_45, %c0_46] : memref<64x64xf32, #tpu.memory_space<vmem>>, vector<64x64xf32>
    %cst_47 = arith.constant dense<0.000000e+00> : vector<8x64xf32>
    %106 = tpu.matmul %104, %105, %cst_47 {dimension_numbers = #tpu.dot_dimension_numbers<[1], [0], [0], [1], [0, 0, 1, 1], [], []>} : vector<8x64xf32>, vector<64x64xf32>, vector<8x64xf32> -> vector<8x64xf32>
    %c0_48 = arith.constant 0 : index
    %c0_49 = arith.constant 0 : index
    %107 = vector.load %arg13[%c0_48, %c0_49] : memref<1x64xf32, #tpu.memory_space<vmem>>, vector<1x64xf32>
    %108 = vector.broadcast %107 : vector<1x64xf32> to vector<8x64xf32>
    %109 = arith.addf %106, %108 : vector<8x64xf32>
    %cst_50 = arith.constant 0.000000e+00 : f32
    %110 = vector.broadcast %cst_50 : f32 to vector<8x64xf32>
    %111 = arith.maximumf %109, %110 : vector<8x64xf32>
    %c0_51 = arith.constant 0 : index
    %c0_52 = arith.constant 0 : index
    %112 = vector.load %arg14[%c0_51, %c0_52] : memref<64x32xf32, #tpu.memory_space<vmem>>, vector<64x32xf32>
    %cst_53 = arith.constant dense<0.000000e+00> : vector<8x32xf32>
    %113 = tpu.matmul %111, %112, %cst_53 {dimension_numbers = #tpu.dot_dimension_numbers<[1], [0], [0], [1], [0, 0, 1, 1], [], []>} : vector<8x64xf32>, vector<64x32xf32>, vector<8x32xf32> -> vector<8x32xf32>
    %c0_54 = arith.constant 0 : index
    %c0_55 = arith.constant 0 : index
    %114 = vector.load %arg15[%c0_54, %c0_55] : memref<1x32xf32, #tpu.memory_space<vmem>>, vector<1x32xf32>
    %115 = vector.broadcast %114 : vector<1x32xf32> to vector<8x32xf32>
    %116 = arith.addf %113, %115 : vector<8x32xf32>
    %cst_56 = arith.constant 0.000000e+00 : f32
    %117 = vector.broadcast %cst_56 : f32 to vector<8x32xf32>
    %118 = arith.maximumf %116, %117 : vector<8x32xf32>
    %c0_57 = arith.constant 0 : index
    %c0_58 = arith.constant 0 : index
    %119 = vector.load %arg16[%c0_57, %c0_58] : memref<1x32xf32, #tpu.memory_space<vmem>>, vector<1x32xf32>
    %120 = vector.broadcast %119 : vector<1x32xf32> to vector<8x32xf32>
    %121 = arith.mulf %118, %120 : vector<8x32xf32>
    %cst_59 = arith.constant dense<0.000000e+00> : vector<8xf32>
    %122 = vector.multi_reduction <add>, %121, %cst_59 [1] : vector<8x32xf32> to vector<8xf32>
    %123 = vector.shape_cast %122 : vector<8xf32> to vector<8x1xf32>
    %c0_60 = arith.constant 0 : index
    %c0_61 = arith.constant 0 : index
    %124 = vector.load %arg17[%c0_60, %c0_61] : memref<1x1xf32, #tpu.memory_space<vmem>>, vector<1x1xf32>
    %125 = vector.broadcast %124 : vector<1x1xf32> to vector<8x1xf32>
    %126 = arith.addf %123, %125 : vector<8x1xf32>
    %127 = arith.negf %126 : vector<8x1xf32>
    %128 = math.exp %127 : vector<8x1xf32>
    %cst_62 = arith.constant 1.000000e+00 : f32
    %129 = vector.broadcast %cst_62 : f32 to vector<8x1xf32>
    %130 = arith.addf %129, %128 : vector<8x1xf32>
    %131 = arith.divf %129, %130 : vector<8x1xf32>
    %c0_63 = arith.constant 0 : index
    %c0_64 = arith.constant 0 : index
    %132 = vector.load %arg18[%c0_63, %c0_64] : memref<8x1xf32, #tpu.memory_space<vmem>>, vector<8x1xf32>
    tpu.vector_store %arg18[%c0_63, %c0_64], %131 {strides = array<i32>} : memref<8x1xf32, #tpu.memory_space<vmem>>, vector<8x1xf32>,
    return
  }
}

</mosaic_0001>

<bundles_post_ra>
// kernel: net_forward.1
= control target key start
LH: loop header
LB: loop body
LE: loop exit
PB: predicated region body
PF: predicated region fallthrough
CT: control target
= control target key end

     0   :  { %vm75_vm0 = vcmask 64512   ;;  %v1254_v0 = vmov 0.0   ;;  %vm1730_vm1 = vmmov 0   ;;  %v1256_v3 = vmov 0   ;;  %s1708_s7 = inlined_call_operand.vmem [shape: f32[8,64], index: 7, kind: input, shape index: {}]   ;;  %s1709_s1 = inlined_call_operand.vmem [shape: f32[24,8], index: 1, kind: input, shape index: {}]   ;;  %s1710_s3 = inlined_call_operand.vmem [shape: f32[24,1], index: 3, kind: input, shape index: {}]   ;;  %s1711_s4 = inlined_call_operand.vmem [shape: f32[24,1], index: 4, kind: input, shape index: {}]   ;;  %s1712_s5 = inlined_call_operand.vmem [shape: f32[24,1], index: 5, kind: input, shape index: {}]   ;;  %s1713_s0 = inlined_call_operand.vmem [shape: bf16[24,24], index: 0, kind: input, shape index: {}]   ;;  %s1714_s9 = inlined_call_operand.vmem [shape: f32[64,64], index: 9, kind: input, shape index: {}]   ;;  %s1715_s6 = inlined_call_operand.vmem [shape: f32[1,24], index: 6, kind: input, shape index: {}]   ;;  %s1716_s8 = inlined_call_operand.vmem [shape: f32[1,64], index: 8, kind: input, shape index: {}]   ;;  %s1717_s11 = inlined_call_operand.vmem [shape: f32[1,64], index: 11, kind: input, shape index: {}]   ;;  %s1718_s10 = inlined_call_operand.vmem [shape: f32[1,64], index: 10, kind: input, shape index: {}]   ;;  %s1719_s12 = inlined_call_operand.vmem [shape: f32[64,64], index: 12, kind: input, shape index: {}]   ;;  %s1720_s2 = inlined_call_operand.vmem [shape: f32[8,24], index: 2, kind: input, shape index: {}]   ;;  %s1721_s14 = inlined_call_operand.vmem [shape: f32[64,32], index: 14, kind: input, shape index: {}]   ;;  %s1722_s13 = inlined_call_operand.vmem [shape: f32[1,64], index: 13, kind: input, shape index: {}]   ;;  %s1723_s17 = inlined_call_operand.<no memory space> [shape: f32[1,1], index: 17, kind: input, shape index: {}]   ;;  %s1724_s15 = inlined_call_operand.vmem [shape: f32[1,32], index: 15, kind: input, shape index: {}]   ;;  %s1725_s16 = inlined_call_operand.vmem [shape: f32[1,32], index: 16, kind: input, shape index: {}]   ;;  %s1726_s18 = inlined_call_operand.vmem [shape: f32[8,1], index: 18, kind: output, shape index: {}]  }
   0x1   :  { %1731 = sst [smem:[#allocation3_spill]] %s1708_s7  ;;  %1067 = vmatprep.subr.mxu0 %v1254_v0  ;;  %1069 = vmatprep.mubr.msk.f32.mxu0 %vm1730_vm1, %v1254_v0  ;;  %v68_v8 = vld [vmem:[%s1711_s4] sm:$0xff]  ;;  %v69_v10 = vld [vmem:[%s1711_s4 + $0x8] sm:$0xff]  ;;  %v70_v11 = vld [vmem:[%s1711_s4 + $0x10] sm:$0xff]  ;;  %vm193_vm2 = vcmask 195584   ;;  %v1257_v14 = vmov 0.0|0.0   ;;  %v474_v22 = vlaneseq }
   0x2   :  { %1732 = sst [smem:[#allocation4_spill]] %s1709_s1  ;;  %s1734_s29 = sld [smem:[#allocation3_spill]]  ;;  %1224 = vset.pattern.permute.xlu0 %v1256_v3  ;;  %1225 = vset.pattern.permute.xlu1 %v1256_v3  ;;  %v583_v12 = vld [vmem:[%s1712_s5] sm:$0xff]  ;;  %v290_v16 = vld [vmem:[%s1714_s9 + $0x8] sm:$0xff]  ;;  %v291_v17 = vld [vmem:[%s1714_s9 + $0x10] sm:$0xff]  ;;  %vm200_vm6 = vcmask 1043456  }
   0x3   :  { %1733 = sst [smem:[#allocation5_spill]] %s1710_s3  ;;  %s1735_s19 = sld [smem:[#allocation4_spill]]  ;;  %v1226_v13 = vld [vmem:[%s1713_s0] sm:$0xff]   ;;  %v292_v19 = vld [vmem:[%s1714_s9 + $0x18] sm:$0xff]  ;;  %v1421_v24 = vshrl.u32 %v474_v22, 7  ;;  %v1423_v25 = vand.u32 127, %v474_v22 }
   0x4   :  { %s1736_s21 = sld [smem:[#allocation5_spill]]  ;;  %1082 = vmatprep.mubr.msk.bf16.mxu1 %vm193_vm2, %v1226_v13  ;;  %v289_v15 = vld [vmem:[%s1714_s9] sm:$0xff]  ;;  %v1179_v20 = vpack.c.bf16 %v292_v19, %v291_v17  ;;  %v1457_v44 = vld [vmem:[%s1713_s0 + $0x8] ss:$0 sps:$4 sm:$0xff]   ;;  %v295_v48 = vld [vmem:[%s1714_s9 + $0x30] sm:$0xff]  ;;  %vm1729_vm7 = vcmask 523264  }
   0x5   :  { %v1176_v18 = vpack.c.bf16 %v290_v16, %v289_v15  ;;  %v1430_v27 = vld [vmem:[%s1715_s6] ss:$0 sm:$0xff]  ;;  %vm610_vm3 = vcmp.ne.s32.totalorder %v1423_v25, %v1421_v24  ;;  %v294_v46 = vld [vmem:[%s1714_s9 + $0x28] sm:$0xff]  ;;  %v296_v49 = vld [vmem:[%s1714_s9 + $0x38] sm:$0xff]  ;;  %vm467_vm8 = vcmask 516096  }
   0x6   :  { %v293_v45 = vld [vmem:[%s1714_s9 + $0x20] sm:$0xff]  ;;  %v1185_v50 = vpack.c.bf16 %v296_v49, %v295_v48  ;;  %vm1189_vm9 = vmpackc.low %vm1729_vm7, %vm1729_vm7 }
   0x7   :  { %v1182_v47 = vpack.c.bf16 %v294_v46, %v293_v45  ;;  %v998_v60 = vld [vmem:[%s1716_s8] ss:$0 sm:$0xff] }
   0x8   :  { %v74_v1 = vld [vmem:[%s1734_s29] sm:$0xff] }
   0x9   :  { %v71_v2 = vld [vmem:[%s1735_s19] sm:$0xff]  ;;  %1068 = vmatpush3.msra.mxu0 %v74_v1  ;;  %v72_v6 = vld [vmem:[%s1735_s19 + $0x8] sm:$0xff]  ;;  %v73_v9 = vld [vmem:[%s1735_s19 + $0x10] sm:$0xff] }
   0xa   :  { %v65_v4 = vld [vmem:[%s1736_s21] sm:$0xff]  ;;  %v67_v5 = vld [vmem:[%s1736_s21 + $0x10] sm:$0xff]  ;;  %1070 = vmatmul.mubr.msk.f32.vlgmr.msra.gmra.mrb[0].mxu0 %vm75_vm0, %v71_v2  ;;  %v66_v7 = vld [vmem:[%s1736_s21 + $0x8] sm:$0xff]  ;;  %1175 = vmatprep.subr.bf16.mxu0 %v1257_v14 }
   0xb   :  { %167 = vperm.xlu0 %1224, %v65_v4   ;;  %1072 = vmatprep.mubr.msk.f32.mxu0 %vm1730_vm1, %v1254_v0 }
   0xc   :  { %177 = vperm.xlu1 %1225, %v67_v5   ;;  %1177 = vmatpush3.bf16.msra.mxu0 %v1176_v18 }
   0xd   :  { %1178 = vmatprep.subr.bf16.mxu0 %v1257_v14 }
   0xe   :  { %1073 = vmatmul.mubr.msk.f32.gmra.mrb[2].mxu0 %vm75_vm0, %v72_v6 }
   0xf   :  { %172 = vperm.xlu0 %1224, %v66_v7   ;;  %1075 = vmatprep.mubr.msk.f32.mxu0 %vm1730_vm1, %v1254_v0 }
  0x10   :  { %257 = vperm.xlu1 %1225, %v68_v8   ;;  %1180 = vmatpush3.bf16.msra.mxu0 %v1179_v20 }
  0x11   :  { %1181 = vmatprep.subr.bf16.mxu0 %v1257_v14 }
  0x12   :  { %1076 = vmatmul.mubr.msk.f32.gmra.mrb[4].mxu0 %vm75_vm0, %v73_v9  ;;  %v465_v9 = vld [vmem:[%s1717_s11] sm:$0x1]  ;;  %vm626_vm0 = vcmp.lt.s32.totalorder %v1423_v25, %v1421_v24 }
  0x13   :  { %262 = vperm.xlu0 %1224, %v69_v10   ;;  %1102 = vmatprep.mubr.msk.f32.mxu0 %vm1730_vm1, %v1254_v0  ;;  %v466_v10 = vmul.f32 %v465_v9, %v465_v9 }
  0x14   :  { %267 = vperm.xlu1 %1225, %v70_v11   ;;  %1183 = vmatpush3.bf16.msra.mxu0 %v1182_v47 }
  0x15   :  { %1184 = vmatprep.subr.bf16.mxu0 %v1257_v14  ;;  %v468_v11 = vsel %vm467_vm8, %v466_v10, 0.0 }
  0x18   :  { %594 = vperm.xlu1 %1225, %v583_v12   ;;  %1186 = vmatpush3.bf16.msra.mxu0 %v1185_v50 }
  0x19   :  { %1191 = vmatprep.subr.bf16.mxu0 %v1257_v14 }
  0x32   :  { %469 = vadd.xlane.f32.xlu0 %v468_v11 }
  0x8a   :  { %v1445_v30 = vpop.permute.xlu0 %167 }
  0x8b   :  { %v1417_v21 = vpop.permute.xlu1 %177 }
  0x8e   :  { %v1447_v33 = vpop.permute.xlu0 %172 }
  0x8f   :  { %v1419_v23 = vpop.permute.xlu1 %257 }
  0x92   :  { %v263_v58 = vpop.permute.xlu0 %262 }
  0x93   :  { %v1425_v26 = vpop.permute.xlu1 %267 }
  0x97   :  { %v1434_v28 = vpop.permute.xlu1 %594 }
  0x98   :  { %vm607_vm4 = vcmp.eq.f32.partialorder %v1430_v27, %v1434_v28 }
  0x99   :  { %vm1441_vm5 = vmand %vm607_vm4, %vm610_vm3 }
  0xdd   :  { %v151_v31 = vpop.f32.mrb[0].mxu0 }
  0xde   :  { %v1071_v32 = vpop.f32.mrb[1].mxu0  ;;  %v180_v35 = vmul.f32 %v1445_v30, %v151_v31  ;;  %v270_v55 = vmul.f32 %v1419_v23, %v151_v31 }
  0xe1   :  { %v156_v34 = vpop.f32.mrb[2].mxu0 }
  0xe2   :  { %v181_v36 = vmul.f32 %v1447_v33, %v156_v34  ;;  %v1074_v37 = vpop.f32.mrb[3].mxu0  ;;  %v271_v62 = vmul.f32 %v263_v58, %v156_v34 }
  0xe4   :  { %v183_v38 = vpack.c.bf16 %v181_v36, %v180_v35  ;;  %v470_v35 = vpop.xlane.xlu0 %469 }
  0xe5   :  { %v161_v39 = vpop.f32.mrb[4].mxu0  ;;  %1228 = vrsqrt.f32 %v470_v35 }
  0xe6   :  { %v182_v40 = vmul.f32 %v1417_v21, %v161_v39  ;;  %v1077_v41 = vpop.f32.mrb[5].mxu0  ;;  %1078 = vmatprep.subr.bf16.mxu1 %v183_v38  ;;  %v272_v52 = vmul.f32 %v1425_v26, %v161_v39 }
  0xe7   :  { %1079 = vmatpush3.bf16.msra.mxu1 %v183_v38 }
  0xe8   :  { %v184_v42 = vpack.c.bf16 %v182_v40, %v182_v40 }
  0xea   :  { %1218 = vmatprep.subr.msk.bf16.mxu1 %vm200_vm6, %v184_v42  ;;  %v202_v43 = vsel %vm200_vm6, %v184_v42, 0  ;;  %v476_v42 = vsub.s32 0, %v1421_v24 }
  0xeb   :  { %1081 = vmatpush3.bf16.msra.mxu1 %v202_v43 }
  0xee   :  { %1083 = vmatmul.mubr.msk.bf16.vlgmr.msra.gmra.mrb[0].mxu1 %vm193_vm2, %v1457_v44 }
  0xef   :  { %1115 = vmatprep.mubr.msk.bf16.mxu1 %vm193_vm2, %v1226_v13  ;;  %v1229_v36 = vpop.eup %1228 }
  0xf0   :  { %v472_v41 = vmul.f32 %v1229_v36, %v465_v9  ;;  %v579_v9 = vadd.s32 16, %v1421_v24 }
  0xf2   :  { %vm612_vm10 = vcmp.ne.s32.totalorder %v1423_v25, %v579_v9 }
 0x1c1   :  { %v1084_v51 = vpop.f32.mrb[0].mxu1 }
 0x1c2   :  { %v254_v53 = vmul.f32 %v1084_v51, %v1417_v21  ;;  %v238_v54 = vpop.f32.mrb[1].mxu1  ;;  %v477_v51 = vrot.slane %v472_v41, %v476_v42 }
 0x1c3   :  { %v252_v56 = vmul.f32 %v238_v54, %v1445_v30  ;;  %v1085_v57 = vpop.f32.mrb[2].mxu1 }
 0x1c4   :  { %v275_v59 = vadd.f32 %v272_v52, %v254_v53  ;;  %v241_v61 = vpop.f32.mrb[3].mxu1 }
 0x1c5   :  { %v273_v63 = vadd.f32 %v270_v55, %v252_v56  ;;  %v253_v1 = vmul.f32 %v241_v61, %v1447_v33 }
 0x1c6   :  { %v1494_v6 = vadd.f32 %v998_v60, %v275_v59 }
 0x1c7   :  { %v1484_v2 = vadd.f32 %v998_v60, %v273_v63  ;;  %v274_v3 = vadd.f32 %v271_v62, %v253_v1  ;;  %v585_v62 = vld [vmem:[%s1712_s5 + $0x10] sm:$0xff]  ;;  %v584_v63 = vld [vmem:[%s1712_s5 + $0x8] sm:$0xff]  ;;  %v650_v1 = vsel %vm607_vm4, 1.0, %v1254_v0 }
 0x1c8   :  { %v288_v8 = vmax.f32 %v1494_v6, 0.0  ;;  %v870_v6 = vld [vmem:[%s1721_s14] sm:$0xff] }
 0x1c9   :  { %v286_v4 = vmax.f32 %v1484_v2, 0.0  ;;  %v1487_v5 = vadd.f32 %v998_v60, %v274_v3  ;;  %v653_v3 = vsel %vm193_vm2, %v650_v1, 0.0 }
 0x1cb   :  { %1103 = vmatmul.mubr.msk.f32.vlgmr.msra.gmra.mrb[6].mxu0 %vm1729_vm7, %v286_v4  ;;  %v287_v7 = vmax.f32 %v1487_v5, 0.0  ;;  %v695_v5 = vld [vmem:[%s1720_s2] sm:$0xff] }
 0x1cc   :  { %1105 = vmatprep.mubr.msk.f32.mxu0 %vm1730_vm1, %v1254_v0 }
 0x1cf   :  { %1106 = vmatmul.mubr.msk.f32.gmra.mrb[8].mxu0 %vm1729_vm7, %v287_v7 }
 0x1d0   :  { %1108 = vmatprep.mubr.msk.f32.mxu0 %vm1730_vm1, %v1254_v0 }
 0x1d3   :  { %1109 = vmatmul.mubr.msk.f32.gmra.mrb[10].mxu0 %vm1729_vm7, %v288_v8 }
 0x1d4   :  { %1134 = vmatprep.mubr.msk.f32.mxu0 %vm1730_vm1, %v1254_v0 }
 0x29e   :  { %v373_v12 = vpop.f32.mrb[6].mxu0 }
 0x29f   :  { %v1104_v13 = vpop.f32.mrb[7].mxu0  ;;  %v387_v16 = vmul.f32 %v373_v12, %v1445_v30  ;;  %v446_v43 = vmul.f32 %v373_v12, %v1419_v23 }
 0x2a2   :  { %v378_v15 = vpop.f32.mrb[8].mxu0 }
 0x2a3   :  { %v388_v17 = vmul.f32 %v378_v15, %v1447_v33  ;;  %v1107_v18 = vpop.f32.mrb[9].mxu0  ;;  %v447_v49 = vmul.f32 %v378_v15, %v263_v58  ;;  %v578_v15 = vadd.s32 8, %v1421_v24 }
 0x2a5   :  { %v390_v19 = vpack.c.bf16 %v388_v17, %v387_v16  ;;  %vm611_vm13 = vcmp.ne.s32.totalorder %v1423_v25, %v578_v15 }
 0x2a6   :  { %v383_v20 = vpop.f32.mrb[10].mxu0 }
 0x2a7   :  { %v389_v22 = vmul.f32 %v383_v20, %v1417_v21  ;;  %v1110_v31 = vpop.f32.mrb[11].mxu0  ;;  %1111 = vmatprep.subr.bf16.mxu1 %v390_v19  ;;  %v448_v38 = vmul.f32 %v383_v20, %v1425_v26 }
 0x2a8   :  { %1112 = vmatpush3.bf16.msra.mxu1 %v390_v19 }
 0x2a9   :  { %v391_v32 = vpack.c.bf16 %v389_v22, %v389_v22 }
 0x2ab   :  { %1219 = vmatprep.subr.msk.bf16.mxu1 %vm200_vm6, %v391_v32  ;;  %v393_v34 = vsel %vm200_vm6, %v391_v32, 0 }
 0x2ac   :  { %1114 = vmatpush3.bf16.msra.mxu1 %v393_v34 }
 0x2ad   :  { %1187 = vmatprep.subr.bf16.mxu1 %v1257_v14 }
 0x2af   :  { %1116 = vmatmul.mubr.msk.bf16.vlgmr.msra.gmra.mrb[4].mxu1 %vm193_vm2, %v1457_v44  ;;  %v1004_v44 = vld [vmem:[%s1718_s10] ss:$0 sm:$0xff] }
 0x2b0   :  { %1125 = vmatprep.mubr.msk.f32.mxu1 %vm1730_vm1, %v1254_v0 }
 0x382   :  { %v1117_v37 = vpop.f32.mrb[4].mxu1 }
 0x383   :  { %v445_v39 = vmul.f32 %v1117_v37, %v1417_v21  ;;  %v429_v40 = vpop.f32.mrb[5].mxu1 }
 0x384   :  { %v443_v45 = vmul.f32 %v429_v40, %v1445_v30  ;;  %v1118_v46 = vpop.f32.mrb[6].mxu1 }
 0x385   :  { %v451_v47 = vadd.f32 %v448_v38, %v445_v39  ;;  %v432_v48 = vpop.f32.mrb[7].mxu1 }
 0x386   :  { %v449_v50 = vadd.f32 %v446_v43, %v443_v45  ;;  %v444_v26 = vmul.f32 %v432_v48, %v1447_v33  ;;  %v783_v43 = vld [vmem:[%s1719_s12 + $0x10] sm:$0xff]  ;;  %v784_v45 = vld [vmem:[%s1719_s12 + $0x18] sm:$0xff]  ;;  %v786_v48 = vld [vmem:[%s1719_s12 + $0x28] sm:$0xff] }
 0x387   :  { %v461_v21 = vadd.f32 %v1004_v44, %v451_v47  ;;  %v1198_v46 = vpack.c.bf16 %v784_v45, %v783_v43  ;;  %v785_v47 = vld [vmem:[%s1719_s12 + $0x20] sm:$0xff]  ;;  %v876_v45 = vld [vmem:[%s1721_s14 + $0x30] sm:$0xff] }
 0x388   :  { %v459_v52 = vadd.f32 %v1004_v44, %v449_v50  ;;  %v450_v53 = vadd.f32 %v447_v49, %v444_v26  ;;  %v1201_v49 = vpack.c.bf16 %v786_v48, %v785_v47  ;;  %v787_v50 = vld [vmem:[%s1719_s12 + $0x30] sm:$0xff]  ;;  %v788_v26 = vld [vmem:[%s1719_s12 + $0x38] sm:$0xff]  ;;  %v1011_v48 = vld [vmem:[%s1722_s13] ss:$0 sm:$0xff] }
 0x389   :  { %v1532_v23 = vmax.f32 %v461_v21, 0.0  ;;  %v1204_v21 = vpack.c.bf16 %v788_v26, %v787_v50 }
 0x38a   :  { %v1534_v54 = vmax.f32 %v459_v52, 0.0  ;;  %v460_v55 = vadd.f32 %v1004_v44, %v450_v53 }
 0x38b   :  { %v481_v30 = vmul.f32 %v477_v51, %v1532_v23 }
 0x38c   :  { %v1537_v56 = vmax.f32 %v460_v55, 0.0  ;;  %v479_v57 = vmul.f32 %v477_v51, %v1534_v54 }
 0x38d   :  { %v488_v58 = vsel %vm1729_vm7, %v481_v30, 0.0 }
 0x38e   :  { %v1188_v33 = vpack.c.bf16 %v1537_v56, %v1534_v54  ;;  %489 = vadd.xlane.f32.xlu0 %v488_v58  ;;  %v482_v59 = vsel %vm1729_vm7, %v479_v57, 0.0  ;;  %v480_v60 = vmul.f32 %v477_v51, %v1537_v56 }
 0x38f   :  { %483 = vadd.xlane.f32.xlu1 %v482_v59 }
 0x390   :  { %1190 = vmatpush3.bf16.xpose.msk.msra.mxu1 %vm1189_vm9, %v1188_v33  ;;  %v485_v61 = vsel %vm1729_vm7, %v480_v60, 0.0  ;;  %vm627_vm9 = vcmp.lt.s32.totalorder %v1423_v25, %v578_v15 }
 0x391   :  { %1123 = vmatprep.subr.mxu1 %v1254_v0 }
 0x392   :  { %486 = vadd.xlane.f32.xlu0 %v485_v61 }
 0x398   :  { %1124 = vmatpush3.xpose.msk.msra.mxu1 %vm1729_vm7, %v1532_v23 }
 0x399   :  { %1194 = vmatprep.subr.bf16.mxu1 %v1257_v14 }
 0x39b   :  { %1126 = vmatmul.mubr.msk.f32.vlgmr.msra.gmra.mrb[8].mxu1 %vm1729_vm7, %v472_v41  ;;  %v781_v41 = vld [vmem:[%s1719_s12] sm:$0xff] }
 0x39c   :  { %1153 = vmatprep.mubr.msk.f32.mxu1 %vm1730_vm1, %v1254_v0  ;;  %vm628_vm1 = vcmp.lt.s32.totalorder %v1423_v25, %v579_v9 }
 0x3a0   :  { %604 = vperm.xlu1 %1225, %v585_v62  }
 0x3a8   :  { %599 = vperm.xlu0 %1224, %v584_v63  }
 0x3c4   :  { %654 = vadd.xlane.f32.xlu1 %v653_v3 }
 0x41b   :  { %v490_v11 = vpop.xlane.xlu0 %489 }
 0x41c   :  { %v484_v10 = vpop.xlane.xlu1 %483 }
 0x41f   :  { %v487_v28 = vpop.xlane.xlu0 %486 }
 0x420   :  { %v605_v12 = vpop.permute.xlu1 %604 }
 0x421   :  { %vm609_vm11 = vcmp.eq.f32.partialorder %v1430_v27, %v605_v12 }
 0x422   :  { %vm1569_vm12 = vmand %vm609_vm11, %vm612_vm10  ;;  %v652_v20 = vsel %vm609_vm11, 1.0, %v1254_v0 }
 0x423   :  { %v659_v22 = vsel %vm193_vm2, %v652_v20, 0.0 }
 0x427   :  { %v600_v16 = vpop.permute.xlu0 %599 }
 0x428   :  { %vm608_vm14 = vcmp.eq.f32.partialorder %v1430_v27, %v600_v16 }
 0x429   :  { %vm1576_vm15 = vmand %vm608_vm14, %vm611_vm13  ;;  %v651_v18 = vsel %vm608_vm14, 1.0, %v1254_v0 }
 0x42a   :  { %v656_v19 = vsel %vm193_vm2, %v651_v18, 0.0 }
 0x42b   :  { %657 = vadd.xlane.f32.xlu0 %v656_v19 }
 0x42f   :  { %660 = vadd.xlane.f32.xlu0 %v659_v22 }
 0x451   :  { %v655_v51 = vpop.xlane.xlu1 %654 }
 0x452   :  { %v662_v53 = vmul.f32 0.8, %v655_v51  ;;  %v677_v58 = vmax.f32 %v655_v51, 1.0  ;;  %v1013_v51 = vld [vmem:[%s1724_s15] ss:$0 sm:$0xff] }
 0x454   :  { %v665_v30 = vceil.f32 %v662_v53 }
 0x456   :  { %v686_v60 = vmax.f32 %v665_v30, 1.0 }
 0x46e   :  { %v568_v31 = vpop.f32.mrb[8].mxu1 }
 0x46f   :  { %1230 = vtanh.f32 %v568_v31  ;;  %v1127_v32 = vpop.f32.mrb[9].mxu1 }
 0x470   :  { %1232 = vtanh.f32 %v484_v10 }
 0x471   :  { %1234 = vtanh.f32 %v487_v28 }
 0x472   :  { %1236 = vtanh.f32 %v490_v11 }
 0x473   :  { %1238 = vrcp.f32 %v677_v58 }
 0x474   :  { %1240 = vrcp.f32 %v686_v60 }
 0x479   :  { %v1231_v27 = vpop.eup %1230 }
 0x47a   :  { %v619_v34 = vrot.slane %v1231_v27, %v476_v42  ;;  %v1588_v35 = vpop.eup %1232  ;;  %v782_v42 = vld [vmem:[%s1719_s12 + $0x8] sm:$0xff] }
 0x47b   :  { %v1590_v36 = vpop.eup %1234  ;;  %v1195_v44 = vpack.c.bf16 %v782_v42, %v781_v41  ;;  %v875_v41 = vld [vmem:[%s1721_s14 + $0x28] sm:$0xff] }
 0x47c   :  { %vm620_vm3 = vcmp.gt.f32.partialorder %v619_v34, %v1588_v35  ;;  %vm623_vm4 = vcmp.eq.f32.partialorder %v619_v34, %v1588_v35  ;;  %vm624_vm8 = vcmp.eq.f32.partialorder %v619_v34, %v1590_v36  ;;  %vm621_vm11 = vcmp.gt.f32.partialorder %v619_v34, %v1590_v36  ;;  %v1597_v37 = vpop.eup %1236 }
 0x47d   :  { %vm629_vm6 = vmand %vm623_vm4, %vm626_vm0  ;;  %vm625_vm7 = vcmp.eq.f32.partialorder %v619_v34, %v1597_v37  ;;  %vm622_vm4 = vcmp.gt.f32.partialorder %v619_v34, %v1597_v37  ;;  %1196 = vmatpush3.bf16.msra.mxu1 %v1195_v44  ;;  %v1239_v13 = vpop.eup %1238 }
 0x47e   :  { %vm632_vm10 = vmor %vm620_vm3, %vm629_vm6  ;;  %1197 = vmatprep.subr.bf16.mxu1 %v1257_v14  ;;  %v1241_v16 = vpop.eup %1240  ;;  %v696_v22 = vmul.f32 %v1239_v13, %v286_v4 }
 0x47f   :  { %vm635_vm13 = vmand %vm1441_vm5, %vm632_vm10  ;;  %vm967_vm10 = vcmask 261120  }
 0x480   :  { %v638_v24 = vsel %vm635_vm13, 1.0, %v1254_v0  ;;  %vm630_vm14 = vmand %vm624_vm8, %vm627_vm9 }
 0x481   :  { %v641_v38 = vsel %vm193_vm2, %v638_v24, 0.0  ;;  %vm633_vm0 = vmor %vm621_vm11, %vm630_vm14  ;;  %1199 = vmatpush3.bf16.msra.mxu1 %v1198_v46  ;;  %v877_v46 = vld [vmem:[%s1721_s14 + $0x38] sm:$0xff]  ;;  %vm985_vm11 = vcmask 7168  }
 0x482   :  { %642 = vadd.xlane.f32.xlu1 %v641_v38  ;;  %vm636_vm3 = vmand %vm1576_vm15, %vm633_vm0  ;;  %1200 = vmatprep.subr.bf16.mxu1 %v1257_v14  ;;  %vm1743_vm15 = vmmov 0   ;;  %v1216_v47 = vpack.c.bf16 %v877_v46, %v876_v45 }
 0x483   :  { %v639_v39 = vsel %vm636_vm3, 1.0, %v1254_v0  ;;  %vm631_vm6 = vmand %vm625_vm7, %vm628_vm1 }
 0x484   :  { %v644_v29 = vsel %vm193_vm2, %v639_v39, 0.0  ;;  %vm634_vm5 = vmor %vm622_vm4, %vm631_vm6 }
 0x485   :  { %645 = vadd.xlane.f32.xlu0 %v644_v29  ;;  %vm637_vm8 = vmand %vm1569_vm12, %vm634_vm5  ;;  %1202 = vmatpush3.bf16.msra.mxu1 %v1201_v49 }
 0x486   :  { %v640_v25 = vsel %vm637_vm8, 1.0, %v1254_v0  ;;  %1203 = vmatprep.subr.bf16.mxu1 %v1257_v14 }
 0x487   :  { %v647_v40 = vsel %vm193_vm2, %v640_v25, 0.0 }
 0x488   :  { %648 = vadd.xlane.f32.xlu1 %v647_v40 }
 0x489   :  { %1205 = vmatpush3.bf16.msra.mxu1 %v1204_v21  ;;  %v23_v21 = vstv %s1723_s17 }
 0x48a   :  { %24 = vst [vmem:[#allocation2] sm:$0x1] %v23_v21 }
 0x4b8   :  { %v658_v52 = vpop.xlane.xlu0 %657 }
 0x4b9   :  { %v663_v55 = vmul.f32 0.8, %v658_v52  ;;  %v678_v61 = vmax.f32 %v658_v52, 1.0 }
 0x4bb   :  { %v666_v33 = vceil.f32 %v663_v55  ;;  %1242 = vrcp.f32 %v678_v61 }
 0x4bc   :  { %v661_v57 = vpop.xlane.xlu0 %660 }
 0x4bd   :  { %v664_v59 = vmul.f32 0.8, %v661_v57  ;;  %v687_v62 = vmax.f32 %v666_v33, 1.0  ;;  %v679_v1 = vmax.f32 %v661_v57, 1.0 }
 0x4bf   :  { %v667_v63 = vceil.f32 %v664_v59  ;;  %1244 = vrcp.f32 %v687_v62  ;;  %v1016_v59 = vld [vmem:[#allocation2] ss:$0 sm:$0xff] }
 0x4c0   :  { %1246 = vrcp.f32 %v679_v1 }
 0x4c1   :  { %v688_v3 = vmax.f32 %v667_v63, 1.0 }
 0x4c3   :  { %1248 = vrcp.f32 %v688_v3 }
 0x4c5   :  { %v1243_v19 = vpop.eup %1242 }
 0x4c9   :  { %v1245_v27 = vpop.eup %1244 }
 0x4ca   :  { %v1247_v38 = vpop.eup %1246 }
 0x4cb   :  { %v698_v4 = vmul.f32 %v1247_v38, %v288_v8  ;;  %v872_v8 = vld [vmem:[%s1721_s14 + $0x10] sm:$0xff] }
 0x4cd   :  { %v1249_v29 = vpop.eup %1248 }
 0x50f   :  { %v643_v9 = vpop.xlane.xlu1 %642 }
 0x510   :  { %vm668_vm1 = vcmp.lt.f32.partialorder %v643_v9, %v665_v30  ;;  %v1015_v30 = vld [vmem:[%s1725_s16] ss:$0 sm:$0xff] }
 0x511   :  { %v671_v10 = vsel %vm668_vm1, 1.0, %v1254_v0 }
 0x512   :  { %v674_v11 = vmul.f32 %v1588_v35, %v671_v10  ;;  %v646_v12 = vpop.xlane.xlu0 %645  ;;  %v697_v35 = vmul.f32 %v1243_v19, %v287_v7  ;;  %v871_v7 = vld [vmem:[%s1721_s14 + $0x8] sm:$0xff] }
 0x513   :  { %vm669_vm7 = vcmp.lt.f32.partialorder %v646_v12, %v666_v33 }
 0x514   :  { %v699_v15 = vmul.f32 %v674_v11, %v1534_v54  ;;  %v672_v28 = vsel %vm669_vm7, 1.0, %v1254_v0 }
 0x515   :  { %v675_v17 = vmul.f32 %v1590_v36, %v672_v28  ;;  %v649_v18 = vpop.xlane.xlu1 %648 }
 0x516   :  { %v702_v20 = vmul.f32 %v1241_v16, %v699_v15  ;;  %vm670_vm12 = vcmp.lt.f32.partialorder %v649_v18, %v667_v63 }
 0x517   :  { %v700_v31 = vmul.f32 %v675_v17, %v1537_v56  ;;  %v673_v32 = vsel %vm670_vm12, 1.0, %v1254_v0 }
 0x518   :  { %v676_v34 = vmul.f32 %v1597_v37, %v673_v32  ;;  %v705_v54 = vadd.f32 %v702_v20, %v696_v22  ;;  %v873_v37 = vld [vmem:[%s1721_s14 + $0x18] sm:$0xff] }
 0x519   :  { %v703_v24 = vmul.f32 %v1245_v27, %v700_v31  ;;  %v1210_v40 = vpack.c.bf16 %v873_v37, %v872_v8 }
 0x51a   :  { %v701_v36 = vmul.f32 %v676_v34, %v1532_v23  ;;  %v1207_v23 = vpack.c.bf16 %v871_v7, %v870_v6 }
 0x51b   :  { %v706_v39 = vadd.f32 %v703_v24, %v697_v35 }
 0x51c   :  { %v704_v25 = vmul.f32 %v1249_v29, %v701_v36 }
 0x51d   :  { %v1192_v2 = vpack.c.bf16 %v706_v39, %v705_v54 }
 0x51e   :  { %v707_v56 = vadd.f32 %v704_v25, %v698_v4 }
 0x51f   :  { %1193 = vmatpush3.bf16.msra.mxu0 %v1192_v2 }
 0x520   :  { %1132 = vmatprep.subr.mxu0 %v1254_v0 }
 0x523   :  { %1133 = vmatpush3.msra.mxu0 %v707_v56 }
 0x524   :  { %1135 = vmatmul.mubr.msk.f32.vlgmr.msra.gmra.mrb[12].mxu0 %vm193_vm2, %v695_v5  ;;  %1206 = vmatprep.subr.bf16.mxu0 %v1257_v14  ;;  %vm1744_vm2 = vcmask 523264  }
 0x525   :  { %1172 = vmatprep.mubr.msk.f32.mxu0 %vm1743_vm15, %v1254_v0  ;;  %1208 = vmatpush3.bf16.msra.mxu0 %v1207_v23  ;;  %v874_v0 = vld [vmem:[%s1721_s14 + $0x20] sm:$0xff]  ;;  %vm1745_vm9 = vmmov %vm1744_vm2 }
 0x526   :  { %1209 = vmatprep.subr.bf16.mxu0 %v1257_v14  ;;  %v1213_v42 = vpack.c.bf16 %v875_v41, %v874_v0 }
 0x529   :  { %1211 = vmatpush3.bf16.msra.mxu0 %v1210_v40 }
 0x52a   :  { %1212 = vmatprep.subr.bf16.mxu0 %v1257_v14 }
 0x52d   :  { %1214 = vmatpush3.bf16.msra.mxu0 %v1213_v42 }
 0x52e   :  { %1215 = vmatprep.subr.bf16.mxu0 %v1257_v14 }
 0x531   :  { %1217 = vmatpush3.bf16.msra.mxu0 %v1216_v47 }
 0x5f7   :  { %v777_v43 = vpop.f32.mrb[12].mxu0 }
 0x5f8   :  { %v1136_v44 = vpop.f32.mrb[13].mxu0  ;;  %1154 = vmatmul.mubr.msk.f32.vlgmr.msra.gmra.mrb[10].mxu1 %vm1744_vm2, %v777_v43 }
 0x6cb   :  { %v865_v49 = vpop.f32.mrb[10].mxu1 }
 0x6cc   :  { %v866_v14 = vadd.f32 %v1011_v48, %v865_v49  ;;  %v1155_v50 = vpop.f32.mrb[11].mxu1 }
 0x6ce   :  { %v869_v26 = vmax.f32 %v866_v14, 0.0 }
 0x6d0   :  { %1173 = vmatmul.mubr.msk.f32.vlgmr.msra.gmra.mrb[14].mxu0 %vm1745_vm9, %v869_v26 }
 0x7a3   :  { %v954_v52 = vpop.f32.mrb[14].mxu0 }
 0x7a4   :  { %v955_v53 = vadd.f32 %v1013_v51, %v954_v52  ;;  %v1174_v55 = vpop.f32.mrb[15].mxu0 }
 0x7a6   :  { %v958_v57 = vmax.f32 %v955_v53, 0.0 }
 0x7a8   :  { %v966_v58 = vmul.f32 %v1015_v30, %v958_v57 }
 0x7aa   :  { %v968_v33 = vsel %vm967_vm10, %v966_v58, 0.0 }
 0x7ab   :  { %969 = vadd.xlane.f32.xlu0 %v968_v33 }
 0x838   :  { %v970_v60 = vpop.xlane.xlu0 %969 }
 0x839   :  { %v978_v61 = vadd.f32 %v1016_v59, %v970_v60 }
 0x83b   :  { %v1017_v62 = vmul.f32 -1.442695, %v978_v61 }
 0x83d   :  { %1250 = vpow2.f32 %v1017_v62 }
 0x847   :  { %v1251_v63 = vpop.eup %1250 }
 0x848   :  { %v982_v1 = vadd.f32 1.0, %v1251_v63 }
 0x84a   :  { %1252 = vrcp.f32 %v982_v1 }
 0x854   :  { %v1253_v3 = vpop.eup %1252 }
 0x855   :  { %986 = vst.msk [vmem:[%s1726_s18] sm:$0xff] %vm985_vm11, %v1253_v3 }

</bundles_post_ra>
